<compile_context>
chip_gen: v6e
topology: v6e:2x2x1
jax: 0.10.0
libtpu: 0.0.40
codegen_flags: <defaults>
</compile_context>

<pallas_src>
import functools

import jax
import jax.numpy as jnp
import numpy as np
from jax.experimental import pallas as pl
from jax.experimental.pallas import tpu as pltpu


def _make_divisible(v, divisor, min_value=None):
    if min_value is None:
        min_value = divisor
    new_v = max(min_value, int(v + divisor / 2) // divisor * divisor)
    if new_v < 0.9 * v:
        new_v += divisor
    return new_v


# ---------------------------------------------------------------------------
# Per-generation hardware queries (all degrade gracefully to safe defaults).
# ---------------------------------------------------------------------------

def _vmem_budget():
    """~75% of physical VMEM (~96 MiB v5e/v6e, ~48 MiB v7x); 32 MiB fallback."""
    try:
        cap = getattr(pltpu.get_tpu_info(), "vmem_capacity_bytes", None)
        if cap:
            return int(cap) * 3 // 4
    except Exception:
        pass
    return 32 * 1024 * 1024


def _num_tensorcores():
    """TensorCores sharing this kernel's grid (2 on megacore chips, e.g. v7x)."""
    try:
        info = pltpu.get_tpu_info()
        for attr in ("num_cores", "core_count", "num_tensorcores", "tensorcore_count"):
            v = getattr(info, attr, None)
            if isinstance(v, int) and v > 0:
                return v
    except Exception:
        pass
    try:
        kind = jax.devices()[0].device_kind.lower()
        if any(tag in kind for tag in ("v4", "v5p", "v7")):
            return 2
    except Exception:
        pass
    return 1


def _vmem_limit_bytes(budget):
    # Budget drives tiling; the compiler limit gets a 16 MiB floor so tiny forced
    # budgets (tests) never starve internal scratch.  Safe on every generation.
    return max(int(budget), 16 * 1024 * 1024)


def _choose_batch_tile(N, C, HW, itemsize, budget, num_cores):
    """Batch elements per grid step for the fused (whole-image-per-step) path."""
    per_batch = C * HW * itemsize
    # Residency per step: 2 input buffers + 2 output buffers (double buffering)
    # + tiny weights  ->  ~5 tile-equivalents of headroom.
    max_tb = max(1, budget // (5 * per_batch))
    tb = min(N, max_tb)
    if num_cores >= 2 and N >= 2:
        # Megacore: the batch grid axis is sharded across TensorCores, so want >=2
        # steps and preferably an even step count -- but never at the cost of
        # collapsing the tile size (give up at most ~half of it).
        tb = min(tb, pl.cdiv(N, 2))
        for cand in range(tb, max(1, tb // 2) - 1, -1):
            if pl.cdiv(N, cand) % 2 == 0:
                tb = cand
                break
    return tb


# ---------------------------------------------------------------------------
# Kernels
# ---------------------------------------------------------------------------

def _se_fused_kernel(x_ref, w1_ref, b1_ref, w2_ref, b2_ref, o_ref):
    """One grid step = TB whole images.

    x_ref : (TB, C, HW)   NCHW with spatial flattened (HW on the lane axis)
    w1_ref: (C, Cr)       conv_reduce 1x1 weight (transposed), f32
    b1_ref: (1, Cr)
    w2_ref: (Cr, C)       conv_expand 1x1 weight (transposed), f32
    b2_ref: (1, C)
    o_ref : (TB, C, HW)
    """
    # --- squeeze: global average pool over spatial, f32 accumulate (read #1 of x) ---
    pooled = jnp.mean(x_ref[...], axis=-1, dtype=jnp.float32)              # (TB, C)

    # --- excite: 1x1 conv reduce -> ReLU -> 1x1 conv expand (tiny, f32; MXU idle) ---
    z = jnp.dot(pooled, w1_ref[...], preferred_element_type=jnp.float32) + b1_ref[...]
    z = jnp.maximum(z, 0.0)
    s = jnp.dot(z, w2_ref[...], preferred_element_type=jnp.float32) + b2_ref[...]

    # --- gate: hard_sigmoid(s) = relu6(s + 3) / 6 ---
    gate = jnp.clip(s + 3.0, 0.0, 6.0) * (1.0 / 6.0)                        # (TB, C)

    # --- scale: re-read x from the resident input buffer (read #2), stream the
    #     vld -> vmul -> vst without holding the big tile live across the excite. ---
    o_ref[...] = x_ref[...] * gate.astype(o_ref.dtype)[:, :, None]


def _pool_sum_kernel(x_ref, sum_ref, *, hw_total, t_hw, needs_mask):
    """Fallback pass 1: accumulate the spatial sum of one image across HW tiles.

    x_ref  : (1, C, t_hw)
    sum_ref: (1, 1, C)  f32 accumulator (same output block across the HW axis)
    """
    h = pl.program_id(1)

    @pl.when(h == 0)
    def _():
        sum_ref[...] = jnp.zeros_like(sum_ref)

    xv = x_ref[...].astype(jnp.float32)
    if needs_mask:
        lane = jax.lax.broadcasted_iota(jnp.int32, xv.shape, 2)
        xv = jnp.where(h * t_hw + lane < hw_total, xv, 0.0)
    sum_ref[...] += jnp.sum(xv, axis=-1)[:, None, :]


def _scale_kernel(x_ref, gate_ref, o_ref):
    """Fallback pass 2: o = x * gate, gate broadcast over the spatial (lane) axis.

    x_ref   : (1, C, t_hw)
    gate_ref: (1, C, 1)
    """
    o_ref[...] = x_ref[...] * gate_ref[...]


# ---------------------------------------------------------------------------
# pallas_call wrappers
# ---------------------------------------------------------------------------

def _se_fused(x, w1, b1, w2, b2, *, budget, num_cores):
    N, C, HW = x.shape
    Cr = w1.shape[1]
    itemsize = jnp.dtype(x.dtype).itemsize
    tb = _choose_batch_tile(N, C, HW, itemsize, budget, num_cores)
    grid = (pl.cdiv(N, tb),)   # partial edge block is fine: writes are masked

    return pl.pallas_call(
        _se_fused_kernel,
        out_shape=jax.ShapeDtypeStruct((N, C, HW), x.dtype),
        grid_spec=pltpu.PrefetchScalarGridSpec(
            num_scalar_prefetch=0,
            grid=grid,
            in_specs=[
                pl.BlockSpec((tb, C, HW), lambda b: (b, 0, 0)),
                pl.BlockSpec((C, Cr), lambda b: (0, 0)),
                pl.BlockSpec((1, Cr), lambda b: (0, 0)),
                pl.BlockSpec((Cr, C), lambda b: (0, 0)),
                pl.BlockSpec((1, C), lambda b: (0, 0)),
            ],
            out_specs=pl.BlockSpec((tb, C, HW), lambda b: (b, 0, 0)),
        ),
        compiler_params=pltpu.CompilerParams(
            dimension_semantics=("parallel",),
            vmem_limit_bytes=_vmem_limit_bytes(budget),
        ),
    )(x, w1, b1, w2, b2)


def _se_spatially_tiled(x, w1, b1, w2, b2, *, budget):
    """Fallback when a single image exceeds the budget: tile over HW (2 passes)."""
    N, C, HW = x.shape
    itemsize = jnp.dtype(x.dtype).itemsize
    cap = max(1, budget // (5 * C * itemsize))          # HW elems per buffer
    if HW <= 128:
        t_hw = HW                                       # full-dim block (legal)
    else:
        t_hw = max(128, (min(cap, HW) // 128) * 128)    # lane-aligned spatial tile
    n_hw = pl.cdiv(HW, t_hw)
    needs_mask = (HW % t_hw) != 0
    vmem_limit = _vmem_limit_bytes(budget)

    # Pass 1: pooled spatial sums (f32), accumulated across the "arbitrary" HW axis.
    pooled_sum = pl.pallas_call(
        functools.partial(_pool_sum_kernel, hw_total=HW, t_hw=t_hw, needs_mask=needs_mask),
        out_shape=jax.ShapeDtypeStruct((N, 1, C), jnp.float32),
        grid_spec=pltpu.PrefetchScalarGridSpec(
            num_scalar_prefetch=0,
            grid=(N, n_hw),
            in_specs=[pl.BlockSpec((1, C, t_hw), lambda b, h: (b, 0, h))],
            out_specs=pl.BlockSpec((1, 1, C), lambda b, h: (b, 0, 0)),
        ),
        compiler_params=pltpu.CompilerParams(
            dimension_semantics=("parallel", "arbitrary"),
            vmem_limit_bytes=vmem_limit,
        ),
    )(x)

    # Tiny excite path (N x C): negligible work, done in plain JAX.
    pooled = pooled_sum.reshape(N, C) * jnp.float32(1.0 / HW)
    z = jnp.maximum(pooled @ w1 + b1, 0.0)
    s = z @ w2 + b2
    gate = (jnp.clip(s + 3.0, 0.0, 6.0) * (1.0 / 6.0)).astype(x.dtype).reshape(N, C, 1)

    # Pass 2: broadcast-multiply the gate over the spatial tiles.
    return pl.pallas_call(
        _scale_kernel,
        out_shape=jax.ShapeDtypeStruct((N, C, HW), x.dtype),
        grid_spec=pltpu.PrefetchScalarGridSpec(
            num_scalar_prefetch=0,
            grid=(N, n_hw),
            in_specs=[
                pl.BlockSpec((1, C, t_hw), lambda b, h: (b, 0, h)),
                pl.BlockSpec((1, C, 1), lambda b, h: (b, 0, 0)),
            ],
            out_specs=pl.BlockSpec((1, C, t_hw), lambda b, h: (b, 0, h)),
        ),
        compiler_params=pltpu.CompilerParams(
            dimension_semantics=("parallel", "parallel"),
            vmem_limit_bytes=vmem_limit,
        ),
    )(x, gate)


def squeeze_excite(x_nchw, w_reduce, b_reduce, w_expand, b_expand, *, vmem_budget=None):
    """x_nchw: (N, C, H, W).  Weights in PyTorch Conv2d layout:
       w_reduce: (Cr, C, 1, 1), b_reduce: (Cr,)
       w_expand: (C, Cr, 1, 1), b_expand: (C,)
    Returns (N, C, H, W)."""
    N, C, H, W = x_nchw.shape
    HW = H * W
    Cr = w_reduce.shape[0]
    itemsize = jnp.dtype(x_nchw.dtype).itemsize

    budget = int(vmem_budget) if vmem_budget is not None else _vmem_budget()
    num_cores = _num_tensorcores()

    # Free reshape: NCHW -> (N, C, HW); no transpose, memory layout unchanged.
    x = x_nchw.reshape(N, C, HW)
    w1 = jnp.transpose(w_reduce.reshape(Cr, C), (1, 0)).astype(jnp.float32)   # (C, Cr)
    b1 = b_reduce.reshape(1, Cr).astype(jnp.float32)
    w2 = jnp.transpose(w_expand.reshape(C, Cr), (1, 0)).astype(jnp.float32)   # (Cr, C)
    b2 = b_expand.reshape(1, C).astype(jnp.float32)

    per_batch = C * HW * itemsize
    if 5 * per_batch <= budget:
        out = _se_fused(x, w1, b1, w2, b2, budget=budget, num_cores=num_cores)
    else:
        out = _se_spatially_tiled(x, w1, b1, w2, b2, budget=budget)

    # Free reshape back to NCHW.
    return out.reshape(N, C, H, W)


def _reference(x_nchw, w_reduce, b_reduce, w_expand, b_expand):
    """Pure-JAX reference of the intended SqueezeExcite forward."""
    N, C, H, W = x_nchw.shape
    Cr = w_reduce.shape[0]
    pooled = jnp.mean(x_nchw, axis=(2, 3))                       # (N, C)
    z = pooled @ w_reduce.reshape(Cr, C).T + b_reduce            # (N, Cr)
    z = jnp.maximum(z, 0.0)
    s = z @ w_expand.reshape(C, Cr).T + b_expand                 # (N, C)
    gate = jnp.clip(s + 3.0, 0.0, 6.0) / 6.0
    return x_nchw * gate[:, :, None, None]


if __name__ == "__main__":
    # Module hyper-params: in_chs=16, se_ratio=0.25, divisor=4 -> reduced_chs=4
    in_chs = 16
    se_ratio = 0.25
    divisor = 4
    reduced_chs = _make_divisible(in_chs * se_ratio, divisor)

    key = jax.random.PRNGKey(0)
    kx, k1, k2, k3, k4 = jax.random.split(key, 5)

    # Deterministic PyTorch-like init (uniform +/- 1/sqrt(fan_in)) for 1x1 convs.
    bound1 = 1.0 / np.sqrt(in_chs)
    w_reduce = jax.random.uniform(k1, (reduced_chs, in_chs, 1, 1),
                                  minval=-bound1, maxval=bound1, dtype=jnp.float32)
    b_reduce = jax.random.uniform(k2, (reduced_chs,),
                                  minval=-bound1, maxval=bound1, dtype=jnp.float32)
    bound2 = 1.0 / np.sqrt(reduced_chs)
    w_expand = jax.random.uniform(k3, (in_chs, reduced_chs, 1, 1),
                                  minval=-bound2, maxval=bound2, dtype=jnp.float32)
    b_expand = jax.random.uniform(k4, (in_chs,),
                                  minval=-bound2, maxval=bound2, dtype=jnp.float32)

    # 1) Main fused path at the nominal small shape (lane-dense HW = 256).
    x = jax.random.normal(kx, (2, in_chs, 16, 16), dtype=jnp.float32)
    out = jax.block_until_ready(squeeze_excite(x, w_reduce, b_reduce, w_expand, b_expand))
    np.testing.assert_allclose(
        np.asarray(out), np.asarray(_reference(x, w_reduce, b_reduce, w_expand, b_expand)),
        rtol=1e-5, atol=1e-5)

    # 2) Fused path, awkward batch (N=3) + tight tiling budget -> pl.cdiv grid with a
    #    partial (masked-write) edge block.
    x3 = jax.random.normal(jax.random.PRNGKey(1), (3, in_chs, 16, 16), dtype=jnp.float32)
    out3 = jax.block_until_ready(
        squeeze_excite(x3, w_reduce, b_reduce, w_expand, b_expand, vmem_budget=200_000))
    np.testing.assert_allclose(
        np.asarray(out3), np.asarray(_reference(x3, w_reduce, b_reduce, w_expand, b_expand)),
        rtol=1e-5, atol=1e-5)

    # 3) Spatially-tiled fallback (single image exceeds the forced budget), HW = 255
    #    not a multiple of 128 so the masked pool tile is exercised.
    x4 = jax.random.normal(jax.random.PRNGKey(2), (3, in_chs, 15, 17), dtype=jnp.float32)
    out4 = jax.block_until_ready(
        squeeze_excite(x4, w_reduce, b_reduce, w_expand, b_expand, vmem_budget=64 * 1024))
    np.testing.assert_allclose(
        np.asarray(out4), np.asarray(_reference(x4, w_reduce, b_reduce, w_expand, b_expand)),
        rtol=1e-5, atol=1e-5)

    print("KERNEL_OK")
</pallas_src>

<mosaic_0001>
module attributes {stable_mosaic.version = 11 : i64} {
  func.func @_se_fused_kernel(%arg0: i32, %arg1: memref<2x16x256xf32, #tpu.memory_space<vmem>>, %arg2: memref<16x4xf32, #tpu.memory_space<vmem>>, %arg3: memref<1x4xf32, #tpu.memory_space<vmem>>, %arg4: memref<4x16xf32, #tpu.memory_space<vmem>>, %arg5: memref<1x16xf32, #tpu.memory_space<vmem>>, %arg6: memref<2x16x256xf32, #tpu.memory_space<vmem>>) attributes {dimension_semantics = [#tpu.dimension_semantics<parallel>], iteration_bounds = array<i64: 1>, scalar_prefetch = 0 : i64, scratch_operands = 0 : i64, tpu.core_type = #tpu.core_type<tc>, window_params = [{transform_indices = @transform_0, window_bounds = array<i64: 2, 16, 256>}, {pipeline_mode = #tpu.pipeline_mode<synchronous>, transform_indices = @transform_1, window_bounds = array<i64: 16, 4>}, {pipeline_mode = #tpu.pipeline_mode<synchronous>, transform_indices = @transform_2, window_bounds = array<i64: 1, 4>}, {pipeline_mode = #tpu.pipeline_mode<synchronous>, transform_indices = @transform_3, window_bounds = array<i64: 4, 16>}, {pipeline_mode = #tpu.pipeline_mode<synchronous>, transform_indices = @transform_4, window_bounds = array<i64: 1, 16>}, {transform_indices = @transform_5, window_bounds = array<i64: 2, 16, 256>}]} {
    %c0 = arith.constant 0 : index
    %c0_0 = arith.constant 0 : index
    %c0_1 = arith.constant 0 : index
    %0 = vector.load %arg1[%c0, %c0_0, %c0_1] : memref<2x16x256xf32, #tpu.memory_space<vmem>>, vector<2x16x256xf32>
    %cst = arith.constant dense<0.000000e+00> : vector<2x16xf32>
    %1 = vector.multi_reduction <add>, %0, %cst [2] : vector<2x16x256xf32> to vector<2x16xf32>
    %cst_2 = arith.constant 2.560000e+02 : f32
    %2 = vector.broadcast %cst_2 : f32 to vector<2x16xf32>
    %3 = arith.divf %1, %2 : vector<2x16xf32>
    %c0_3 = arith.constant 0 : index
    %c0_4 = arith.constant 0 : index
    %4 = vector.load %arg2[%c0_3, %c0_4] : memref<16x4xf32, #tpu.memory_space<vmem>>, vector<16x4xf32>
    %cst_5 = arith.constant dense<0.000000e+00> : vector<2x4xf32>
    %5 = tpu.matmul %3, %4, %cst_5 {dimension_numbers = #tpu.dot_dimension_numbers<[1], [0], [0], [1], [0, 0, 1, 1], [], []>} : vector<2x16xf32>, vector<16x4xf32>, vector<2x4xf32> -> vector<2x4xf32>
    %c0_6 = arith.constant 0 : index
    %c0_7 = arith.constant 0 : index
    %6 = vector.load %arg3[%c0_6, %c0_7] : memref<1x4xf32, #tpu.memory_space<vmem>>, vector<1x4xf32>
    %7 = vector.broadcast %6 : vector<1x4xf32> to vector<2x4xf32>
    %8 = arith.addf %5, %7 : vector<2x4xf32>
    %cst_8 = arith.constant 0.000000e+00 : f32
    %9 = vector.broadcast %cst_8 : f32 to vector<2x4xf32>
    %10 = arith.maximumf %8, %9 : vector<2x4xf32>
    %c0_9 = arith.constant 0 : index
    %c0_10 = arith.constant 0 : index
    %11 = vector.load %arg4[%c0_9, %c0_10] : memref<4x16xf32, #tpu.memory_space<vmem>>, vector<4x16xf32>
    %cst_11 = arith.constant dense<0.000000e+00> : vector<2x16xf32>
    %12 = tpu.matmul %10, %11, %cst_11 {dimension_numbers = #tpu.dot_dimension_numbers<[1], [0], [0], [1], [0, 0, 1, 1], [], []>} : vector<2x4xf32>, vector<4x16xf32>, vector<2x16xf32> -> vector<2x16xf32>
    %c0_12 = arith.constant 0 : index
    %c0_13 = arith.constant 0 : index
    %13 = vector.load %arg5[%c0_12, %c0_13] : memref<1x16xf32, #tpu.memory_space<vmem>>, vector<1x16xf32>
    %14 = vector.broadcast %13 : vector<1x16xf32> to vector<2x16xf32>
    %15 = arith.addf %12, %14 : vector<2x16xf32>
    %cst_14 = arith.constant 3.000000e+00 : f32
    %16 = vector.broadcast %cst_14 : f32 to vector<2x16xf32>
    %17 = arith.addf %15, %16 : vector<2x16xf32>
    %cst_15 = arith.constant 0.000000e+00 : f32
    %cst_16 = arith.constant 6.000000e+00 : f32
    %18 = vector.broadcast %cst_15 : f32 to vector<2x16xf32>
    %19 = arith.maximumf %18, %17 : vector<2x16xf32>
    %20 = vector.broadcast %cst_16 : f32 to vector<2x16xf32>
    %21 = arith.minimumf %20, %19 : vector<2x16xf32>
    %cst_17 = arith.constant 0.166666672 : f32
    %22 = vector.broadcast %cst_17 : f32 to vector<2x16xf32>
    %23 = arith.mulf %21, %22 : vector<2x16xf32>
    %c0_18 = arith.constant 0 : index
    %c0_19 = arith.constant 0 : index
    %c0_20 = arith.constant 0 : index
    %24 = vector.load %arg1[%c0_18, %c0_19, %c0_20] : memref<2x16x256xf32, #tpu.memory_space<vmem>>, vector<2x16x256xf32>
    %25 = vector.shape_cast %23 : vector<2x16xf32> to vector<2x16x1xf32>
    %26 = vector.broadcast %25 : vector<2x16x1xf32> to vector<2x16x256xf32>
    %27 = arith.mulf %24, %26 : vector<2x16x256xf32>
    %c0_21 = arith.constant 0 : index
    %c0_22 = arith.constant 0 : index
    %c0_23 = arith.constant 0 : index
    %28 = vector.load %arg6[%c0_21, %c0_22, %c0_23] : memref<2x16x256xf32, #tpu.memory_space<vmem>>, vector<2x16x256xf32>
    tpu.vector_store %arg6[%c0_21, %c0_22, %c0_23], %27 {strides = array<i32>} : memref<2x16x256xf32, #tpu.memory_space<vmem>>, vector<2x16x256xf32>,
    return
  }
  func.func @transform_0(%arg0: i32) -> (i32, i32, i32) {
    %c0_i32 = arith.constant 0 : i32
    %c0_i32_0 = arith.constant 0 : i32
    %c0_i32_1 = arith.constant 0 : i32
    return %arg0, %c0_i32, %c0_i32_0 : i32, i32, i32
  }
  func.func @transform_1(%arg0: i32) -> (i32, i32) {
    %c0_i32 = arith.constant 0 : i32
    %c0_i32_0 = arith.constant 0 : i32
    %c0_i32_1 = arith.constant 0 : i32
    return %c0_i32, %c0_i32_0 : i32, i32
  }
  func.func @transform_2(%arg0: i32) -> (i32, i32) {
    %c0_i32 = arith.constant 0 : i32
    %c0_i32_0 = arith.constant 0 : i32
    %c0_i32_1 = arith.constant 0 : i32
    return %c0_i32, %c0_i32_0 : i32, i32
  }
  func.func @transform_3(%arg0: i32) -> (i32, i32) {
    %c0_i32 = arith.constant 0 : i32
    %c0_i32_0 = arith.constant 0 : i32
    %c0_i32_1 = arith.constant 0 : i32
    return %c0_i32, %c0_i32_0 : i32, i32
  }
  func.func @transform_4(%arg0: i32) -> (i32, i32) {
    %c0_i32 = arith.constant 0 : i32
    %c0_i32_0 = arith.constant 0 : i32
    %c0_i32_1 = arith.constant 0 : i32
    return %c0_i32, %c0_i32_0 : i32, i32
  }
  func.func @transform_5(%arg0: i32) -> (i32, i32, i32) {
    %c0_i32 = arith.constant 0 : i32
    %c0_i32_0 = arith.constant 0 : i32
    %c0_i32_1 = arith.constant 0 : i32
    return %arg0, %c0_i32, %c0_i32_0 : i32, i32, i32
  }
}

</mosaic_0001>

<bundles_post_ra>
// kernel: tpu_custom_call.1
= control target key start
LH: loop header
LB: loop body
LE: loop exit
PB: predicated region body
PF: predicated region fallthrough
CT: control target
= control target key end

     0   :  { %10 = vsyncpa [#allocation3], 0  ;;  %s483_s0 = inlined_call_operand.hbm [shape: f32[2,16,256], index: 0, kind: input, shape index: {}]   ;;  %s484_s1 = inlined_call_operand.vmem [shape: f32[16,4], index: 1, kind: input, shape index: {}]   ;;  %s485_s2 = inlined_call_operand.vmem [shape: f32[1,4], index: 2, kind: input, shape index: {}]   ;;  %s486_s3 = inlined_call_operand.vmem [shape: f32[4,16], index: 3, kind: input, shape index: {}]   ;;  %s487_s4 = inlined_call_operand.vmem [shape: f32[1,16], index: 4, kind: input, shape index: {}]   ;;  %s488_s5 = inlined_call_operand.hbm [shape: f32[2,16,256], index: 5, kind: output, shape index: {}]  }
   0x1   :  { %11 = vsyncpa [#allocation4], 0  ;;  %s388_s18 = smov [#allocation2]  }
   0x2   :  { %s17_s19 = sshll.u32 %s388_s18, 4  ;;  %s18_s19 = int_to_ptr.vmem [resolvable:$true] %s17_s19 }
   0x3   :  { %s352_s20 = scalar_lea.vmem %s18_s19, 1024  ;;  %p357_p1 = scmp.lt.s32.totalorder %s18_s19, %s18_s19 }
   0x4   :  { %p353_p0 = scmp.ne.s32.totalorder %s18_s19, %s352_s20  ;;  %p358_p2 = scmp.lt.s32.totalorder %s352_s20, %s352_s20 }
   0x6   :  { %p359_p3 = por %p358_p2, %p357_p1 }
   0x8   :  { %p360_p4 = pnand %p359_p3, %p353_p0 }
   0xa   :  { %363 = shalt.err (!%p360_p4)
}
   0xb   :  { %s389_s21 = smov 256   ;;  %s390_s22 = smov 16  }
   0xc   :  { %23 = dma.hbm_to_vmem [thread:$0]  %s483_s0, 1024, %s18_s19, [#allocation3], %s389_s21, %s389_s21, %s390_s22  }
   0xd   :  { %384 = dma.done.wait [#allocation3], 1024  }
   0xe   :  { %385 = vsyncadd [#allocation3], 4294966272  ;;  %v430_v0 = vld [vmem:[#allocation2 + $0x20] sm:$0xff]  ;;  %v432_v1 = vld [vmem:[#allocation2 + $0x28] sm:$0xff]  ;;  %v391_v12 = vmov 0.0   ;;  %vm392_vm0 = vmmov 0   ;;  %v73_v15 = vlaneseq }
   0xf   :  { %v434_v2 = vld [vmem:[#allocation2] sm:$0xff]  ;;  %v49_v3 = vadd.f32 %v432_v1, %v430_v0  ;;  %v438_v4 = vld [vmem:[#allocation2 + $0x8] sm:$0xff]  ;;  %v440_v5 = vld [vmem:[#allocation2 + $0x30] sm:$0xff]  ;;  %326 = vmatprep.subr.mxu0 %v391_v12  ;;  %333 = vmatprep.subr.mxu1 %v391_v12  ;;  %vm84_vm1 = vcmask 130112   ;;  %vm95_vm2 = vcmask 1041409   ;;  %vm97_vm3 = vcmask 130048  }
  0x10   :  { %v442_v6 = vld [vmem:[#allocation2 + $0x38] sm:$0xff]  ;;  %v43_v7 = vadd.f32 %v438_v4, %v434_v2  ;;  %v446_v8 = vld [vmem:[#allocation2 + $0x10] sm:$0xff]  ;;  %v61_v13 = vld [vmem:[%s484_s1 + $0x8] sm:$0xff]  ;;  %330 = vmatprep.mubr.msk.f32.mxu0 %vm392_vm0, %v391_v12  ;;  %335 = vmatprep.mubr.msk.f32.mxu1 %vm392_vm0, %v391_v12  ;;  %v74_v16 = vand.u32 127, %v73_v15  ;;  %v76_v17 = vshrl.u32 %v73_v15, 7  ;;  %vm183_vm4 = vcmask 1043456  }
  0x11   :  { %v448_v9 = vld [vmem:[#allocation2 + $0x18] sm:$0xff]  ;;  %50 = vadd.xlane.f32.xlu1 %v49_v3  ;;  %v52_v10 = vadd.f32 %v442_v6, %v440_v5  ;;  %v60_v14 = vld [vmem:[%s484_s1] sm:$0xff]  ;;  %327 = vmatpush3.msra.mxu0 %v61_v13  ;;  %vm179_vm5 = vcmask 31744  }
  0x12   :  { %44 = vadd.xlane.f32.xlu0 %v43_v7  ;;  %v46_v11 = vadd.f32 %v448_v9, %v446_v8  ;;  %328 = vmatprep.subr.mxu0 %v391_v12  ;;  %v79_v18 = vadd.s32 4294967288, %v74_v16  ;;  %v77_v21 = vsub.s32 %v74_v16, %v76_v17  ;;  %v171_v36 = vld [vmem:[%s486_s3] sm:$0xf]  ;;  %v263_v49 = vsub.s32 0, %v76_v17 }
  0x13   :  { %329 = vmatpush3.msra.mxu0 %v60_v14  ;;  %334 = vmatpush3.msk.msra.mxu1 %vm183_vm4, %v171_v36  ;;  %v316_v37 = vld [vmem:[%s485_s2] ss:$0 sm:$0xff]  ;;  %v274_v52 = vsub.s32 1, %v76_v17  ;;  %s393_s2 = smov [#allocation5]  }
  0x14   :  { %v82_v23 = vsub.s32 %v79_v18, %v76_v17  ;;  %v318_v42 = vld [vmem:[%s487_s4] ss:$0 sm:$0xff]  ;;  %s304_s3 = sshll.u32 %s393_s2, 4  ;;  %s305_s3 = int_to_ptr.vmem [resolvable:$true] %s304_s3 }
  0x15   :  { %53 = vadd.xlane.f32.xlu1 %v52_v10  ;;  %s364_s4 = scalar_lea.vmem %s305_s3, 1024  ;;  %p369_p6 = scmp.lt.s32.totalorder %s305_s3, %s305_s3 }
  0x16   :  { %47 = vadd.xlane.f32.xlu0 %v46_v11  ;;  %p365_p5 = scmp.ne.s32.totalorder %s305_s3, %s364_s4  ;;  %p370_p7 = scmp.lt.s32.totalorder %s364_s4, %s364_s4 }
  0x18   :  { %p371_p8 = por %p370_p7, %p369_p6 }
  0x1a   :  { %p372_p9 = pnand %p371_p8, %p365_p5 }
  0x9a   :  { %v51_v19 = vpop.xlane.xlu1 %50 }
  0x9b   :  { %v45_v20 = vpop.xlane.xlu0 %44  ;;  %v58_v22 = vmul.f32 0.00390625, %v51_v19 }
  0x9c   :  { %v56_v24 = vmul.f32 0.00390625, %v45_v20 }
  0x9d   :  { %v89_v29 = vrot.slane %v58_v22, %v77_v21 }
  0x9e   :  { %v54_v25 = vpop.xlane.xlu1 %53  ;;  %v78_v31 = vrot.slane %v56_v24, %v77_v21 }
  0x9f   :  { %v59_v26 = vmul.f32 0.00390625, %v54_v25  ;;  %v48_v27 = vpop.xlane.xlu0 %47 }
  0xa0   :  { %v57_v28 = vmul.f32 0.00390625, %v48_v27 }
  0xa1   :  { %v93_v30 = vrot.slane %v59_v26, %v82_v23 }
  0xa2   :  { %v83_v32 = vrot.slane %v57_v28, %v82_v23 }
  0xa3   :  { %v94_v33 = vsel %vm84_vm1, %v93_v30, %v89_v29 }
  0xa4   :  { %v85_v34 = vsel %vm84_vm1, %v83_v32, %v78_v31 }
  0xa5   :  { %v96_v35 = vsel %vm95_vm2, %v94_v33, %v85_v34 }
  0xa6   :  { %331 = vmatmul.mubr.msk.f32.vlgmr.msra.gmra.mxu0 %vm97_vm3, %v96_v35 }
 0x166   :  { %v166_v38 = vpop.f32.mrf.mxu0 }
 0x167   :  { %v167_v39 = vadd.f32 %v316_v37, %v166_v38 }
 0x168   :  { %v332_v40 = vpop.f32.mrf.mxu0 }
 0x169   :  { %v170_v41 = vmax.f32 %v167_v39, 0.0 }
 0x16b   :  { %336 = vmatmul.mubr.msk.f32.vlgmr.msra.gmra.mxu1 %vm179_vm5, %v170_v41 }
 0x22b   :  { %v253_v43 = vpop.f32.mrf.mxu1 }
 0x22c   :  { %v254_v44 = vadd.f32 %v318_v42, %v253_v43 }
 0x22d   :  { %v337_v45 = vpop.f32.mrf.mxu1 }
 0x22e   :  { %v257_v46 = vadd.f32 3.0, %v254_v44 }
 0x230   :  { %v258_v47 = vmax.f32 %v257_v46, 0.0 }
 0x232   :  { %v259_v48 = vmin.f32 %v258_v47, 6.0 }
 0x234   :  { %v260_v50 = vmul.f32 0.16666667, %v259_v48 }
 0x236   :  { %v264_v51 = vrot.slane %v260_v50, %v263_v49  ;;  %v275_v53 = vrot.slane %v260_v50, %v274_v52 }
 0x238   :  { %270 = vbcast.lane.b32.xlu1 %v264_v51, 264  ;;  %266 = vbcast.lane.b32.xlu0 %v264_v51, 256 }
 0x23c   :  { %277 = vbcast.lane.b32.xlu1 %v275_v53, 256 }
 0x240   :  { %281 = vbcast.lane.b32.xlu1 %v275_v53, 264 }
 0x2aa   :  { %v271_v54 = vpop.permute.xlu1 %270  ;;  %v267_v55 = vpop.permute.xlu0 %266 }
 0x2ab   :  { %v285_v56 = vmul.f32 %v271_v54, %v446_v8  ;;  %v286_v57 = vmul.f32 %v271_v54, %v448_v9  ;;  %v283_v58 = vmul.f32 %v267_v55, %v434_v2  ;;  %v284_v59 = vmul.f32 %v267_v55, %v438_v4 }
 0x2ad   :  { %293 = vst [vmem:[#allocation5 + $0x10] sm:$0xff] %v285_v56  ;;  %294 = vst [vmem:[#allocation5 + $0x18] sm:$0xff] %v286_v57 }
 0x2ae   :  { %291 = vst [vmem:[#allocation5] sm:$0xff] %v283_v58  ;;  %292 = vst [vmem:[#allocation5 + $0x8] sm:$0xff] %v284_v59  ;;  %v278_v60 = vpop.permute.xlu1 %277 }
 0x2af   :  { %v287_v61 = vmul.f32 %v278_v60, %v430_v0  ;;  %v288_v62 = vmul.f32 %v278_v60, %v432_v1 }
 0x2b1   :  { %295 = vst [vmem:[#allocation5 + $0x20] sm:$0xff] %v287_v61  ;;  %296 = vst [vmem:[#allocation5 + $0x28] sm:$0xff] %v288_v62 }
 0x2b2   :  { %v282_v63 = vpop.permute.xlu1 %281 }
 0x2b3   :  { %v289_v3 = vmul.f32 %v282_v63, %v440_v5  ;;  %v290_v2 = vmul.f32 %v282_v63, %v442_v6 }
 0x2b5   :  { %297 = vst [vmem:[#allocation5 + $0x30] sm:$0xff] %v289_v3  ;;  %298 = vst [vmem:[#allocation5 + $0x38] sm:$0xff] %v290_v2 }
 0x2b6   :  { %375 = shalt.err (!%p372_p9)
}
 0x2b7   :  { %310 = dma.vmem_to_hbm [thread:$0]  %s305_s3, 1024, %s488_s5, [#allocation4], %s389_s21, %s389_s21, %s390_s22  }
 0x2b8   :  { %386 = dma.done.wait [#allocation4], 1024  }
 0x2b9   :  { %387 = vsyncadd [#allocation4], 4294966272 }
 0x2ba   :  { %314 = vsyncpa [#allocation3], 1 }
 0x2bb   :  { %315 = vsyncpa [#allocation4], 1 }

</bundles_post_ra>
